<compile_context>
chip_gen: v7x
topology: tpu7x:2x2x1
jax: 0.10.0
libtpu: 0.0.40
codegen_flags: <defaults>
</compile_context>

<pallas_src>
import jax
import jax.numpy as jnp
from jax.experimental import pallas as pl
from jax.experimental.pallas import tpu as pltpu


def _round_up(x, m):
    return ((x + m - 1) // m) * m


def _num_tensorcores():
    """TensorCores reachable via the 'parallel' grid axis (v7x: 2, v5e/v6e: 1)."""
    try:
        kind = (getattr(jax.devices()[0], "device_kind", "") or "").lower()
    except Exception:
        return 1
    return 2 if "v7" in kind else 1


def _choose_tiling(B, n_cores):
    """Pick (tile_b, b_pad) so row padding is minimal and all TCs get work."""
    b8 = _round_up(B, 8)
    if n_cores >= 2 and b8 >= 16:
        # >=2 grid steps (even count) so both v7x TensorCores are busy; cap the
        # tile at ~2048 rows (double-buffered working set stays in single-digit MB).
        n_tiles = 2
        tile_b = _round_up(-(-b8 // n_tiles), 8)
        while tile_b > 2048:
            n_tiles += 2
            tile_b = _round_up(-(-b8 // n_tiles), 8)
        return tile_b, tile_b * n_tiles
    # Single-TC chips (v5e/v6e): one big tile while it fits comfortably in VMEM
    # (grid is a serial loop there; extra steps are pure per-step overhead).
    if b8 <= 4096:
        return b8, b8
    # Huge B: large tiles, pick the one minimizing padding (ties -> larger tile).
    best_t, best_pad = None, None
    for t in (512, 1024, 2048):
        pad = _round_up(b8, t) - b8
        if best_pad is None or pad < best_pad or (pad == best_pad and t > best_t):
            best_t, best_pad = t, pad
    return best_t, _round_up(b8, best_t)


def _controller_kernel(z_ref, h_ref, wz_ref, wh_ref, b_ref, out_ref):
    # fc(cat([z, h], 1)) == z @ Wz^T + h @ Wh^T + b; weights are pre-split and
    # pre-transposed -> two plain MXU matmuls (f32 accumulation), no concat.
    acc = jnp.dot(z_ref[...], wz_ref[...], preferred_element_type=jnp.float32)
    acc = acc + jnp.dot(h_ref[...], wh_ref[...], preferred_element_type=jnp.float32)
    out_ref[...] = (acc + b_ref[...]).astype(out_ref.dtype)


def prepare_controller_params(w, b, latents, compute_dtype=jnp.bfloat16):
    """One-time (init-time) parameter prep — NOT in the per-step hot path.

    w: (actions, latents + recurrents)  [PyTorch nn.Linear layout]
    b: (actions,)

    Returns (wzT, whT, bP, actions):
      wzT: (latents,    N_pad)  -- W[:, :latents].T, lane-padded, compute_dtype
      whT: (recurrents, N_pad)  -- W[:, latents:].T, lane-padded, compute_dtype
      bP : (1, N_pad)           -- bias, lane-padded, kept f32 (added once after
                                   the f32-accumulated dots)
    N_pad = round_up(actions, 128) so the kernel's output is lane-dense.
    """
    actions, in_features = w.shape
    recurrents = in_features - latents
    n_pad = _round_up(actions, 128)

    wzT = jnp.zeros((latents, n_pad), compute_dtype).at[:, :actions].set(
        jnp.transpose(w[:, :latents]).astype(compute_dtype))
    whT = jnp.zeros((recurrents, n_pad), compute_dtype).at[:, :actions].set(
        jnp.transpose(w[:, latents:]).astype(compute_dtype))
    bP = jnp.zeros((1, n_pad), jnp.float32).at[0, :actions].set(
        b.astype(jnp.float32))
    return wzT, whT, bP, actions


def controller_forward(z, h, wzT, whT, bP, *, out_dtype=jnp.float32):
    """z: (B, latents), h: (B, recurrents); wzT/whT/bP from prepare_controller_params.

    Returns a (B, N_pad) lane-padded array: only the first `actions` lanes are
    meaningful; the consumer ignores/slices the rest lazily (avoids an extra
    HBM round trip here). Pass out_dtype=jnp.bfloat16 to halve output HBM bytes.
    """
    B, latents = z.shape
    recurrents = h.shape[1]
    n_pad = bP.shape[1]
    compute_dtype = wzT.dtype

    z = z.astype(compute_dtype)
    h = h.astype(compute_dtype)

    tile_b, b_pad = _choose_tiling(B, _num_tensorcores())
    if b_pad != B:  # at most a few rows in the common paths
        z = jnp.pad(z, ((0, b_pad - B), (0, 0)))
        h = jnp.pad(h, ((0, b_pad - B), (0, 0)))

    itemsize = jnp.dtype(compute_dtype).itemsize
    bytes_accessed = (
        b_pad * (latents + recurrents) * itemsize          # z + h
        + (latents + recurrents) * n_pad * itemsize        # weights
        + n_pad * 4                                        # bias (f32)
        + b_pad * n_pad * jnp.dtype(out_dtype).itemsize)   # output
    cost = pl.CostEstimate(
        flops=2 * b_pad * (latents + recurrents) * n_pad,
        transcendentals=0,
        bytes_accessed=bytes_accessed)

    out = pl.pallas_call(
        _controller_kernel,
        out_shape=jax.ShapeDtypeStruct((b_pad, n_pad), out_dtype),
        grid_spec=pltpu.PrefetchScalarGridSpec(
            num_scalar_prefetch=0,
            grid=(b_pad // tile_b,),
            in_specs=[
                pl.BlockSpec((tile_b, latents), lambda i: (i, 0)),
                pl.BlockSpec((tile_b, recurrents), lambda i: (i, 0)),
                pl.BlockSpec((latents, n_pad), lambda i: (0, 0)),     # replicated
                pl.BlockSpec((recurrents, n_pad), lambda i: (0, 0)),  # replicated
                pl.BlockSpec((1, n_pad), lambda i: (0, 0)),           # replicated
            ],
            out_specs=pl.BlockSpec((tile_b, n_pad), lambda i: (i, 0)),
        ),
        compiler_params=pltpu.CompilerParams(
            dimension_semantics=("parallel",)),
        cost_estimate=cost,
    )(z, h, wzT, whT, bP)

    # Only strip padded *rows* (padded lanes are left for the consumer).
    return out[:B] if b_pad != B else out


if __name__ == "__main__":
    # Small shapes implied by Controller(latents, recurrents, actions)
    batch = 2
    latents = 32
    recurrents = 64
    actions = 8

    key = jax.random.PRNGKey(0)
    kz, kh, kw, kb = jax.random.split(key, 4)

    z = jax.random.normal(kz, (batch, latents), dtype=jnp.float32)
    h = jax.random.normal(kh, (batch, recurrents), dtype=jnp.float32)

    # Deterministic parameter init (synthetic; mimics nn.Linear param shapes)
    in_features = latents + recurrents
    bound = 1.0 / jnp.sqrt(in_features)
    w = jax.random.uniform(kw, (actions, in_features), jnp.float32, -bound, bound)
    b = jax.random.uniform(kb, (actions,), jnp.float32, -bound, bound)

    ref = jnp.concatenate([z, h], axis=1) @ w.T + b

    # ---- exact f32 path (tight correctness check) ----
    wzT32, whT32, bP32, _ = prepare_controller_params(
        w, b, latents, compute_dtype=jnp.float32)
    out32 = jax.block_until_ready(controller_forward(z, h, wzT32, whT32, bP32))
    assert out32.shape[0] == batch and out32.shape[1] >= actions
    assert jnp.allclose(out32[:, :actions], ref, atol=1e-5, rtol=1e-5)

    # ---- default bf16 data-movement path (f32 accumulation, relaxed tolerance) ----
    wzT, whT, bP, _ = prepare_controller_params(
        w, b, latents, compute_dtype=jnp.bfloat16)
    out = jax.block_until_ready(controller_forward(z, h, wzT, whT, bP))
    assert out.shape[0] == batch
    assert jnp.allclose(out[:, :actions], ref, atol=5e-2, rtol=5e-2)

    # ---- large-batch path (exercises multi-tile grid on v7x / single big tile
    #      on v5e/v6e; B=300 pads to 304 rows, not 512) ----
    big_b = 300
    kz2, kh2 = jax.random.split(jax.random.PRNGKey(1), 2)
    z2 = jax.random.normal(kz2, (big_b, latents), dtype=jnp.float32)
    h2 = jax.random.normal(kh2, (big_b, recurrents), dtype=jnp.float32)
    out2 = jax.block_until_ready(controller_forward(z2, h2, wzT, whT, bP))
    ref2 = jnp.concatenate([z2, h2], axis=1) @ w.T + b
    assert out2.shape[0] == big_b
    assert jnp.allclose(out2[:, :actions], ref2, atol=5e-2, rtol=5e-2)

    print("KERNEL_OK")
</pallas_src>

<mosaic_0001>
module attributes {stable_mosaic.version = 11 : i64} {
  func.func @_controller_kernel(%arg0: i32, %arg1: memref<8x32xf32, #tpu.memory_space<vmem>>, %arg2: memref<8x64xf32, #tpu.memory_space<vmem>>, %arg3: memref<32x128xf32, #tpu.memory_space<vmem>>, %arg4: memref<64x128xf32, #tpu.memory_space<vmem>>, %arg5: memref<1x128xf32, #tpu.memory_space<vmem>>, %arg6: memref<8x128xf32, #tpu.memory_space<vmem>>) attributes {dimension_semantics = [#tpu.dimension_semantics<parallel>], iteration_bounds = array<i64: 1>, scalar_prefetch = 0 : i64, scratch_operands = 0 : i64, tpu.core_type = #tpu.core_type<tc>, window_params = [{transform_indices = @transform_0, window_bounds = array<i64: 8, 32>}, {transform_indices = @transform_1, window_bounds = array<i64: 8, 64>}, {pipeline_mode = #tpu.pipeline_mode<synchronous>, transform_indices = @transform_2, window_bounds = array<i64: 32, 128>}, {pipeline_mode = #tpu.pipeline_mode<synchronous>, transform_indices = @transform_3, window_bounds = array<i64: 64, 128>}, {pipeline_mode = #tpu.pipeline_mode<synchronous>, transform_indices = @transform_4, window_bounds = array<i64: 1, 128>}, {transform_indices = @transform_5, window_bounds = array<i64: 8, 128>}]} {
    %c0 = arith.constant 0 : index
    %c0_0 = arith.constant 0 : index
    %0 = vector.load %arg1[%c0, %c0_0] : memref<8x32xf32, #tpu.memory_space<vmem>>, vector<8x32xf32>
    %c0_1 = arith.constant 0 : index
    %c0_2 = arith.constant 0 : index
    %1 = vector.load %arg3[%c0_1, %c0_2] : memref<32x128xf32, #tpu.memory_space<vmem>>, vector<32x128xf32>
    %cst = arith.constant dense<0.000000e+00> : vector<8x128xf32>
    %2 = tpu.matmul %0, %1, %cst {dimension_numbers = #tpu.dot_dimension_numbers<[1], [0], [0], [1], [0, 0, 1, 1], [], []>} : vector<8x32xf32>, vector<32x128xf32>, vector<8x128xf32> -> vector<8x128xf32>
    %c0_3 = arith.constant 0 : index
    %c0_4 = arith.constant 0 : index
    %3 = vector.load %arg2[%c0_3, %c0_4] : memref<8x64xf32, #tpu.memory_space<vmem>>, vector<8x64xf32>
    %c0_5 = arith.constant 0 : index
    %c0_6 = arith.constant 0 : index
    %4 = vector.load %arg4[%c0_5, %c0_6] : memref<64x128xf32, #tpu.memory_space<vmem>>, vector<64x128xf32>
    %cst_7 = arith.constant dense<0.000000e+00> : vector<8x128xf32>
    %5 = tpu.matmul %3, %4, %cst_7 {dimension_numbers = #tpu.dot_dimension_numbers<[1], [0], [0], [1], [0, 0, 1, 1], [], []>} : vector<8x64xf32>, vector<64x128xf32>, vector<8x128xf32> -> vector<8x128xf32>
    %6 = arith.addf %2, %5 : vector<8x128xf32>
    %c0_8 = arith.constant 0 : index
    %c0_9 = arith.constant 0 : index
    %7 = vector.load %arg5[%c0_8, %c0_9] : memref<1x128xf32, #tpu.memory_space<vmem>>, vector<1x128xf32>
    %8 = vector.broadcast %7 : vector<1x128xf32> to vector<8x128xf32>
    %9 = arith.addf %6, %8 : vector<8x128xf32>
    %c0_10 = arith.constant 0 : index
    %c0_11 = arith.constant 0 : index
    %10 = vector.load %arg6[%c0_10, %c0_11] : memref<8x128xf32, #tpu.memory_space<vmem>>, vector<8x128xf32>
    tpu.vector_store %arg6[%c0_10, %c0_11], %9 {strides = array<i32>} : memref<8x128xf32, #tpu.memory_space<vmem>>, vector<8x128xf32>,
    return
  }
  func.func @transform_0(%arg0: i32) -> (i32, i32) {
    %c0_i32 = arith.constant 0 : i32
    %c0_i32_0 = arith.constant 0 : i32
    return %arg0, %c0_i32 : i32, i32
  }
  func.func @transform_1(%arg0: i32) -> (i32, i32) {
    %c0_i32 = arith.constant 0 : i32
    %c0_i32_0 = arith.constant 0 : i32
    return %arg0, %c0_i32 : i32, i32
  }
  func.func @transform_2(%arg0: i32) -> (i32, i32) {
    %c0_i32 = arith.constant 0 : i32
    %c0_i32_0 = arith.constant 0 : i32
    %c0_i32_1 = arith.constant 0 : i32
    return %c0_i32, %c0_i32_0 : i32, i32
  }
  func.func @transform_3(%arg0: i32) -> (i32, i32) {
    %c0_i32 = arith.constant 0 : i32
    %c0_i32_0 = arith.constant 0 : i32
    %c0_i32_1 = arith.constant 0 : i32
    return %c0_i32, %c0_i32_0 : i32, i32
  }
  func.func @transform_4(%arg0: i32) -> (i32, i32) {
    %c0_i32 = arith.constant 0 : i32
    %c0_i32_0 = arith.constant 0 : i32
    %c0_i32_1 = arith.constant 0 : i32
    return %c0_i32, %c0_i32_0 : i32, i32
  }
  func.func @transform_5(%arg0: i32) -> (i32, i32) {
    %c0_i32 = arith.constant 0 : i32
    %c0_i32_0 = arith.constant 0 : i32
    return %arg0, %c0_i32 : i32, i32
  }
}

</mosaic_0001>

<bundles_post_ra>
// kernel: tpu_custom_call.1
= control target key start
LH: loop header
LB: loop body
LE: loop exit
PB: predicated region body
PF: predicated region fallthrough
CT: control target
= control target key end

     0   :  { %10 = vsyncpa [#allocation3], 0  ;;  %s556_s0 = inlined_call_operand.hbm [shape: f32[8,32], index: 0, kind: input, shape index: {}]   ;;  %s557_s1 = inlined_call_operand.hbm [shape: f32[8,64], index: 1, kind: input, shape index: {}]   ;;  %s558_s2 = inlined_call_operand.hbm [shape: f32[32,128], index: 2, kind: input, shape index: {}]   ;;  %s559_s3 = inlined_call_operand.hbm [shape: f32[64,128], index: 3, kind: input, shape index: {}]   ;;  %s560_s4 = inlined_call_operand.vmem [shape: f32[1,128], index: 4, kind: input, shape index: {}]   ;;  %s561_s5 = inlined_call_operand.hbm [shape: f32[8,128], index: 5, kind: output, shape index: {}]  }
   0x1   :  { %11 = vsyncpa [#allocation6], 0 }
   0x2   :  { %12 = vsyncpa [#allocation9], 0 }
   0x3   :  { %13 = vsyncpa [#allocation4], 0  ;;  %s453_s18 = smov [#allocation5]   ;;  %s454_s20 = smov [#allocation2]  }
   0x4   :  { %s30_s19 = sshll.u32 %s453_s18, 4  ;;  %s20_s21 = sshll.u32 %s454_s20, 4  ;;  %s31_s19 = int_to_ptr.vmem [resolvable:$true] %s30_s19  ;;  %s21_s21 = int_to_ptr.vmem [resolvable:$true] %s20_s21 }
   0x5   :  { %s335_s24 = scalar_lea.hbm %s557_s1, 128 }
   0x6   :  { %p336_p0 = scmp.ne.s32.totalorder %s557_s1, %s335_s24  ;;  %p339_p1 = scmp.lt.u32.totalorder %s335_s24, %s557_s1 }
   0x8   :  { %p341_p2 = pnand %p339_p1, %p336_p0 }
   0xa   :  { %344 = shalt.err (!%p341_p2)
}
   0xb   :  { %s345_s29 = scalar_lea.vmem %s31_s19, 128  ;;  %p350_p4 = scmp.lt.s32.totalorder %s31_s19, %s31_s19 }
   0xc   :  { %p346_p3 = scmp.ne.s32.totalorder %s31_s19, %s345_s29  ;;  %p351_p5 = scmp.lt.s32.totalorder %s345_s29, %s345_s29 }
   0xe   :  { %p352_p6 = por %p351_p5, %p350_p4 }
  0x10   :  { %p353_p7 = pnand %p352_p6, %p346_p3 }
  0x12   :  { %356 = shalt.err (!%p353_p7)
}
  0x13   :  { %33 = dma.hbm_to_vmem [thread:$0]  %s557_s1, 128, %s31_s19, [#allocation6]  }
  0x14   :  { %s357_s9 = scalar_lea.hbm %s556_s0, 128 }
  0x15   :  { %p358_p8 = scmp.ne.s32.totalorder %s556_s0, %s357_s9  ;;  %p361_p9 = scmp.lt.u32.totalorder %s357_s9, %s556_s0 }
  0x17   :  { %p363_p10 = pnand %p361_p9, %p358_p8 }
  0x19   :  { %366 = shalt.err (!%p363_p10)
}
  0x1a   :  { %s367_s14 = scalar_lea.vmem %s21_s21, 128  ;;  %p372_p12 = scmp.lt.s32.totalorder %s21_s21, %s21_s21 }
  0x1b   :  { %p368_p11 = scmp.ne.s32.totalorder %s21_s21, %s367_s14  ;;  %p373_p13 = scmp.lt.s32.totalorder %s367_s14, %s367_s14 }
  0x1d   :  { %p374_p0 = por %p373_p13, %p372_p12 }
  0x1f   :  { %p375_p1 = pnand %p374_p0, %p368_p11 }
  0x21   :  { %378 = shalt.err (!%p375_p1)
}
  0x22   :  { %23 = dma.hbm_to_vmem [thread:$0]  %s556_s0, 128, %s21_s21, [#allocation3]  }
  0x23   :  { %s455_s16 = smov [#allocation7]   ;;  %s379_s20 = scalar_lea.hbm %s558_s2, 512 }
  0x24   :  { %s39_s17 = sshll.u32 %s455_s16, 4  ;;  %p380_p2 = scmp.ne.s32.totalorder %s558_s2, %s379_s20  ;;  %s40_s17 = int_to_ptr.vmem [resolvable:$true] %s39_s17 }
  0x25   :  { %p383_p3 = scmp.lt.u32.totalorder %s379_s20, %s558_s2 }
  0x27   :  { %p385_p4 = pnand %p383_p3, %p380_p2 }
  0x29   :  { %388 = shalt.err (!%p385_p4)
}
  0x2a   :  { %s389_s26 = scalar_lea.vmem %s40_s17, 512  ;;  %p394_p6 = scmp.lt.s32.totalorder %s40_s17, %s40_s17 }
  0x2b   :  { %p390_p5 = scmp.ne.s32.totalorder %s40_s17, %s389_s26  ;;  %p395_p7 = scmp.lt.s32.totalorder %s389_s26, %s389_s26 }
  0x2d   :  { %p396_p8 = por %p395_p7, %p394_p6 }
  0x2f   :  { %p397_p9 = pnand %p396_p8, %p390_p5 }
  0x31   :  { %400 = shalt.err (!%p397_p9)
}
  0x32   :  { %s456_s0 = smov 128   ;;  %s457_s21 = smov 8  }
  0x33   :  { %45 = dma.hbm_to_vmem [thread:$0]  %s558_s2, 512, %s40_s17, [#allocation6], %s456_s0, %s456_s0, %s457_s21  }
  0x34   :  { %s458_s29 = smov [#allocation8]   ;;  %s401_s8 = scalar_lea.hbm %s559_s3, 1024 }
  0x35   :  { %s51_s30 = sshll.u32 %s458_s29, 4  ;;  %p402_p10 = scmp.ne.s32.totalorder %s559_s3, %s401_s8  ;;  %s52_s30 = int_to_ptr.vmem [resolvable:$true] %s51_s30 }
  0x36   :  { %p405_p11 = scmp.lt.u32.totalorder %s401_s8, %s559_s3 }
  0x38   :  { %p407_p12 = pnand %p405_p11, %p402_p10 }
  0x3a   :  { %410 = shalt.err (!%p407_p12)
}
  0x3b   :  { %s411_s13 = scalar_lea.vmem %s52_s30, 1024  ;;  %p416_p0 = scmp.lt.s32.totalorder %s52_s30, %s52_s30 }
  0x3c   :  { %p412_p13 = scmp.ne.s32.totalorder %s52_s30, %s411_s13  ;;  %p417_p1 = scmp.lt.s32.totalorder %s411_s13, %s411_s13 }
  0x3e   :  { %p418_p2 = por %p417_p1, %p416_p0 }
  0x40   :  { %p419_p3 = pnand %p418_p2, %p412_p13 }
  0x42   :  { %422 = shalt.err (!%p419_p3)
}
  0x43   :  { %57 = dma.hbm_to_vmem [thread:$0]  %s559_s3, 1024, %s52_s30, [#allocation9], %s456_s0, %s456_s0, %s457_s21  }
  0x44   :  { %445 = dma.done.wait [#allocation3], 128  }
  0x45   :  { %446 = vsyncadd [#allocation3], 4294967168 }
  0x46   :  { %447 = dma.done.wait [#allocation6], 640  }
  0x47   :  { %448 = vsyncadd [#allocation6], 4294966656 }
  0x48   :  { %449 = dma.done.wait [#allocation9], 1024  }
  0x49   :  { %450 = vsyncadd [#allocation9], 4294966272  ;;  %v459_v0 = vmov 0.0|0.0   ;;  %vm460_vm0 = vmmov 0   ;;  %v461_v1 = vmov 0.0   ;;  %v78_v2 = vld [vmem:[#allocation8] sm:$0xff] }
  0x4a   :  { %307 = vmatprep.subr.bf16.mxu0 %v459_v0  ;;  %319 = vmatprep.subr.bf16.mxu1 %v459_v0  ;;  %v79_v3 = vld [vmem:[#allocation8 + $0x8] sm:$0xff]  ;;  %v80_v4 = vld [vmem:[#allocation8 + $0x10] sm:$0xff]  ;;  %v81_v6 = vld [vmem:[#allocation8 + $0x18] sm:$0xff]  ;;  %vm160_vm1 = vcmask 261120   ;;  %vm86_vm2 = vcmask 523264   ;;  %s462_s15 = smov [#allocation10]  }
  0x4b   :  { %304 = vmatprep.mubr.msk.f32.mxu1 %vm460_vm0, %v461_v1  ;;  %293 = vmatprep.mubr.msk.f32.mxu0 %vm460_vm0, %v461_v1  ;;  %v308_v5 = vpack.c.bf16 %v79_v3, %v78_v2  ;;  %v73_v7 = vld [vmem:[#allocation7] sm:$0xff]  ;;  %v74_v8 = vld [vmem:[#allocation7 + $0x8] sm:$0xff]  ;;  %v75_v10 = vld [vmem:[#allocation7 + $0x10] sm:$0xff]  ;;  %v311_v11 = vpack.c.bf16 %v81_v6, %v80_v4  ;;  %s249_s16 = sshll.u32 %s462_s15, 4  ;;  %s250_s16 = int_to_ptr.vmem [resolvable:$true] %s249_s16 }
  0x4c   :  { %v320_v9 = vpack.c.bf16 %v74_v8, %v73_v7  ;;  %v76_v12 = vld [vmem:[#allocation7 + $0x18] sm:$0xff]  ;;  %v82_v13 = vld [vmem:[#allocation8 + $0x20] sm:$0xff]  ;;  %v83_v14 = vld [vmem:[#allocation8 + $0x28] sm:$0xff]  ;;  %s423_s17 = scalar_lea.vmem %s250_s16, 128  ;;  %p428_p5 = scmp.lt.s32.totalorder %s250_s16, %s250_s16 }
  0x4d   :  { %309 = vmatpush3.bf16.msra.mxu0 %v308_v5  ;;  %v323_v15 = vpack.c.bf16 %v76_v12, %v75_v10  ;;  %v314_v16 = vpack.c.bf16 %v83_v14, %v82_v13  ;;  %v84_v17 = vld [vmem:[#allocation8 + $0x30] sm:$0xff]  ;;  %v85_v18 = vld [vmem:[#allocation8 + $0x38] sm:$0xff]  ;;  %p424_p4 = scmp.ne.s32.totalorder %s250_s16, %s423_s17  ;;  %p429_p6 = scmp.lt.s32.totalorder %s423_s17, %s423_s17 }
  0x4e   :  { %310 = vmatprep.subr.bf16.mxu0 %v459_v0  ;;  %321 = vmatpush3.bf16.msra.mxu1 %v320_v9  ;;  %v72_v19 = vld [vmem:[#allocation2] sm:$0xff]  ;;  %v317_v20 = vpack.c.bf16 %v85_v18, %v84_v17  ;;  %v77_v21 = vld [vmem:[#allocation5] sm:$0xff] }
  0x4f   :  { %322 = vmatprep.subr.bf16.mxu1 %v459_v0  ;;  %v262_v25 = vld [vmem:[%s560_s4] ss:$0 sm:$0xff]  ;;  %p430_p7 = por %p429_p6, %p428_p5 }
  0x51   :  { %312 = vmatpush3.bf16.msra.mxu0 %v311_v11  ;;  %p431_p8 = pnand %p430_p7, %p424_p4 }
  0x52   :  { %313 = vmatprep.subr.bf16.mxu0 %v459_v0  ;;  %324 = vmatpush3.bf16.msra.mxu1 %v323_v15 }
  0x55   :  { %315 = vmatpush3.bf16.msra.mxu0 %v314_v16  ;;  %305 = vmatmul.mubr.msk.f32.vlgmr.msra.gmra.mrb[0].mxu1 %vm160_vm1, %v72_v19 }
  0x56   :  { %316 = vmatprep.subr.bf16.mxu0 %v459_v0 }
  0x59   :  { %318 = vmatpush3.bf16.msra.mxu0 %v317_v20 }
  0x5c   :  { %294 = vmatmul.mubr.msk.f32.vlgmr.msra.gmra.mrb[0].mxu0 %vm86_vm2, %v77_v21 }
 0x128   :  { %v230_v22 = vpop.f32.mrb[0].mxu1 }
 0x129   :  { %v306_v23 = vpop.f32.mrb[1].mxu1 }
 0x12f   :  { %v156_v24 = vpop.f32.mrb[0].mxu0 }
 0x130   :  { %v231_v26 = vadd.f32 %v230_v22, %v156_v24  ;;  %v295_v27 = vpop.f32.mrb[1].mxu0 }
 0x132   :  { %v241_v28 = vadd.f32 %v262_v25, %v231_v26 }
 0x134   :  { %242 = vst [vmem:[#allocation10] sm:$0xff] %v241_v28 }
 0x135   :  { %434 = shalt.err (!%p431_p8)
}
 0x136   :  { %s435_s20 = scalar_lea.hbm %s561_s5, 128 }
 0x137   :  { %p436_p9 = scmp.ne.s32.totalorder %s561_s5, %s435_s20  ;;  %p439_p10 = scmp.lt.u32.totalorder %s435_s20, %s561_s5 }
 0x139   :  { %p441_p11 = pnand %p439_p10, %p436_p9 }
 0x13b   :  { %444 = shalt.err (!%p441_p11)
}
 0x13c   :  { %252 = dma.vmem_to_hbm [thread:$0]  %s250_s16, 128, %s561_s5, [#allocation4]  }
 0x13d   :  { %451 = dma.done.wait [#allocation4], 128  }
 0x13e   :  { %452 = vsyncadd [#allocation4], 4294967168 }
 0x13f   :  { %256 = vsyncpa [#allocation3], 1 }
 0x140   :  { %257 = vsyncpa [#allocation6], 1 }
 0x141   :  { %258 = vsyncpa [#allocation9], 1 }
 0x142   :  { %259 = vsyncpa [#allocation4], 1 }

</bundles_post_ra>
